<compile_context>
chip_gen: v7x
topology: tpu7x:2x2x1
jax: 0.10.0
libtpu: 0.0.40
codegen_flags: <defaults>
</compile_context>

<pallas_src>
import functools
import math

import jax
import jax.numpy as jnp
from jax import lax
from jax.experimental import pallas as pl
from jax.experimental.pallas import tpu as pltpu

_MIB = 1024 * 1024


def _round_up(x: int, m: int) -> int:
    return ((x + m - 1) // m) * m


def _vmem_capacity_bytes() -> int:
    """Physical per-core VMEM; conservative (v7x, 64 MiB) fallback if query fails."""
    try:
        info = pltpu.get_tpu_info()
        for attr in ("vmem_capacity_bytes", "vmem_bytes", "vmem_size_bytes"):
            val = getattr(info, attr, None)
            if val:
                return int(val)
    except Exception:
        pass
    return 64 * _MIB


def _vmem_budget():
    """(per-tile byte budget, pallas vmem_limit_bytes) — generation aware."""
    cap = _vmem_capacity_bytes()
    if cap <= 64 * _MIB:                 # v7x-class: 64 MiB physical VMEM per TC
        return 8 * _MIB, 48 * _MIB
    return 16 * _MIB, 96 * _MIB          # v5e / v6e: 128 MiB physical VMEM


def _pick_tiles(b_dim: int, c_dim: int, tile_budget: int):
    """Sublane/lane-aligned (tm, tn); tn grown toward ~tile_budget f32 bytes."""
    tm = min(_round_up(max(b_dim, 1), 8), 128)
    max_tn = max(128, (tile_budget // (tm * 4)) // 128 * 128)
    tn = min(_round_up(max(c_dim, 1), 128), max_tn, 32768)
    return tm, tn


def _adacos_stats_kernel(s_ref, labels_ref, logits_ref, sum_ref, tgt_ref, *,
                         num_class: int, kt_inner: int, kt_total: int,
                         ragged_edge: bool):
    """Per-row sum of exp(s*logits) over non-target classes + target-logit gather.

    Grid = (class split, batch tiles, class tiles per split); last axis is a
    reduction with resident VMEM outputs (init under pl.when, axis "arbitrary").
    """
    c_split = pl.program_id(0)
    k_in = pl.program_id(2)

    @pl.when(k_in == 0)
    def _():
        sum_ref[...] = jnp.zeros_like(sum_ref)
        tgt_ref[...] = jnp.zeros_like(tgt_ref)

    tm, tn = logits_ref.shape
    logits = logits_ref[...]                       # (tm, tn) f32
    labels = labels_ref[...]                       # (tm, 1)  int32
    k_global = c_split * kt_inner + k_in

    col = k_global * tn + lax.broadcasted_iota(jnp.int32, (tm, tn), 1)
    is_target = col == labels                      # one-hot(labels) positions
    e = jnp.exp(s_ref[0, 0] * logits)              # transcendental -> EUP slot

    def _accumulate(keep):
        sum_ref[...] += jnp.sum(jnp.where(keep, e, 0.0), axis=1, keepdims=True)
        tgt_ref[...] += jnp.sum(jnp.where(is_target, logits, 0.0),
                                axis=1, keepdims=True)

    if ragged_edge:
        # Only the globally-last class tile pays the class-range mask.
        is_edge = k_global == kt_total - 1

        @pl.when(is_edge)
        def _():
            _accumulate(jnp.logical_and(col < num_class,
                                        jnp.logical_not(is_target)))

        @pl.when(jnp.logical_not(is_edge))
        def _():
            _accumulate(jnp.logical_not(is_target))
    else:
        _accumulate(jnp.logical_not(is_target))


def _adacos_scale_kernel(s_ref, logits_ref, out_ref):
    """out = s * logits, s is a (1,1) f32 scalar living in SMEM."""
    out_ref[...] = logits_ref[...] * s_ref[0, 0]


def adacos_forward(labels, logits, s=None):
    """Functional adaCos.forward: labels (B,) int, logits (B, C) f32 -> (B, C) f32."""
    b_dim, c_dim = logits.shape
    tile_budget, vmem_limit = _vmem_budget()

    if s is None:
        s = jnp.float32(math.sqrt(2.0) * math.log(c_dim - 1))
    s_in = jnp.reshape(s, (1, 1)).astype(jnp.float32)

    logits = logits.astype(jnp.float32)
    labels2d = labels.astype(jnp.int32).reshape(b_dim, 1)

    # ----------------- pass 1: tiled class-axis reduction -------------------
    tm, tn = _pick_tiles(b_dim, c_dim, tile_budget)
    bt = pl.cdiv(b_dim, tm)
    kt_total = pl.cdiv(c_dim, tn)
    # v7x megacore: split the class axis across cores only when the batch axis
    # alone cannot feed two TensorCores and the class tiles split evenly.
    split = 2 if (bt < 2 and kt_total >= 2 and kt_total % 2 == 0) else 1
    kt_inner = kt_total // split
    ragged_edge = (c_dim % tn) != 0

    kernel1 = functools.partial(
        _adacos_stats_kernel, num_class=c_dim, kt_inner=kt_inner,
        kt_total=kt_total, ragged_edge=ragged_edge)

    row_sum_parts, tgt_parts = pl.pallas_call(
        kernel1,
        out_shape=(jax.ShapeDtypeStruct((split, b_dim, 1), jnp.float32),
                   jax.ShapeDtypeStruct((split, b_dim, 1), jnp.float32)),
        grid_spec=pltpu.PrefetchScalarGridSpec(
            num_scalar_prefetch=0,
            grid=(split, bt, kt_inner),
            in_specs=[
                pl.BlockSpec(memory_space=pltpu.MemorySpace.SMEM),       # s (1,1)
                pl.BlockSpec((tm, 1), lambda c, i, k: (i, 0)),           # labels
                pl.BlockSpec((tm, tn),
                             lambda c, i, k: (i, c * kt_inner + k)),     # logits tile
            ],
            out_specs=[
                pl.BlockSpec((None, tm, 1), lambda c, i, k: (c, i, 0)),  # resident over k
                pl.BlockSpec((None, tm, 1), lambda c, i, k: (c, i, 0)),
            ],
        ),
        compiler_params=pltpu.CompilerParams(
            dimension_semantics=("parallel", "parallel", "arbitrary"),
            vmem_limit_bytes=vmem_limit,
        ),
        cost_estimate=pl.CostEstimate(
            flops=6 * b_dim * c_dim,
            transcendentals=b_dim * c_dim,
            bytes_accessed=4 * b_dim * c_dim + 16 * b_dim,
        ),
    )(s_in, labels2d, logits)

    # ----------------- O(B) scalar epilogue (torch.no_grad block) -----------
    row_sum = jnp.sum(row_sum_parts, axis=0)[:, 0]            # (B,)
    tgt = jnp.sum(tgt_parts, axis=0)[:, 0]                    # (B,) logit at label col
    b_avg = jnp.mean(row_sum)
    theta = jnp.arccos(jnp.clip(tgt, -1.0 + 1e-7, 1.0 - 1e-7))
    theta_med = jnp.sort(theta)[(b_dim - 1) // 2]             # torch lower median
    s_new = jnp.log(b_avg) / jnp.cos(
        jnp.minimum(jnp.float32(math.pi / 4.0), theta_med))
    s_out = jnp.reshape(s_new, (1, 1)).astype(jnp.float32)

    # ----------------- pass 2: scaled logits (lane-dense big tiles) ---------
    tm2, tn2 = _pick_tiles(b_dim, c_dim, tile_budget // 2)    # in+out double-buffered
    scaled = pl.pallas_call(
        _adacos_scale_kernel,
        out_shape=jax.ShapeDtypeStruct((b_dim, c_dim), jnp.float32),
        grid_spec=pltpu.PrefetchScalarGridSpec(
            num_scalar_prefetch=0,
            grid=(pl.cdiv(b_dim, tm2), pl.cdiv(c_dim, tn2)),
            in_specs=[
                pl.BlockSpec(memory_space=pltpu.MemorySpace.SMEM),       # s_new
                pl.BlockSpec((tm2, tn2), lambda i, j: (i, j)),
            ],
            out_specs=pl.BlockSpec((tm2, tn2), lambda i, j: (i, j)),
        ),
        compiler_params=pltpu.CompilerParams(
            dimension_semantics=("parallel", "parallel"),
            vmem_limit_bytes=vmem_limit,
        ),
        cost_estimate=pl.CostEstimate(
            flops=b_dim * c_dim,
            transcendentals=0,
            bytes_accessed=8 * b_dim * c_dim,
        ),
    )(s_out, logits)

    return scaled


if __name__ == "__main__":
    B, NUM_CLASS = 8, 200

    key = jax.random.PRNGKey(0)
    k1, k2 = jax.random.split(key)
    logits = jax.random.uniform(k1, (B, NUM_CLASS), dtype=jnp.float32,
                                minval=-1.0, maxval=1.0)      # cosine-like inputs
    labels = jax.random.randint(k2, (B,), 0, NUM_CLASS, dtype=jnp.int32)

    out = jax.jit(adacos_forward)(labels, logits)
    out = jax.block_until_ready(out)
    assert out.shape == (B, NUM_CLASS)

    # Pure-JAX reference reproducing the PyTorch forward.
    s0 = math.sqrt(2.0) * math.log(NUM_CLASS - 1)
    mask = jax.nn.one_hot(labels, NUM_CLASS, dtype=jnp.float32)
    b_avg_ref = jnp.mean(jnp.sum(
        jnp.where(mask == 1, 0.0, jnp.exp(s0 * logits)), axis=1))
    tgt_ref = logits[jnp.arange(B), labels]
    theta_ref = jnp.arccos(jnp.clip(tgt_ref, -1.0 + 1e-7, 1.0 - 1e-7))
    theta_med_ref = jnp.sort(theta_ref)[(B - 1) // 2]          # torch lower-median
    s_ref = jnp.log(b_avg_ref) / jnp.cos(
        jnp.minimum(jnp.float32(math.pi / 4.0), theta_med_ref))
    ref = s_ref * logits

    assert jnp.allclose(out, ref, atol=1e-3, rtol=1e-4), "mismatch vs reference"
    print("KERNEL_OK")
</pallas_src>

<mosaic_0001>
module attributes {stable_mosaic.version = 11 : i64} {
  func.func @_adacos_stats_kernel(%arg0: i32, %arg1: i32, %arg2: i32, %arg3: memref<1x1xf32, #tpu.memory_space<smem>>, %arg4: memref<8x1xi32, #tpu.memory_space<vmem>>, %arg5: memref<8x256xf32, #tpu.memory_space<vmem>>, %arg6: memref<1x8x1xf32, #tpu.memory_space<vmem>>, %arg7: memref<1x8x1xf32, #tpu.memory_space<vmem>>) attributes {dimension_semantics = [#tpu.dimension_semantics<parallel>, #tpu.dimension_semantics<parallel>, #tpu.dimension_semantics<arbitrary>], iteration_bounds = array<i64: 1, 1, 1>, scalar_prefetch = 0 : i64, scratch_operands = 0 : i64, tpu.core_type = #tpu.core_type<tc>, window_params = [{transform_indices = @transform_0, window_bounds = array<i64: 1, 1>}, {transform_indices = @transform_1, window_bounds = array<i64: 8, 1>}, {transform_indices = @transform_2, window_bounds = array<i64: 8, 256>}, {transform_indices = @transform_3, window_bounds = array<i64: 1, 8, 1>}, {transform_indices = @transform_4, window_bounds = array<i64: 1, 8, 1>}]} {
    %c0_i32 = arith.constant 0 : i32
    %0 = arith.cmpi eq, %arg2, %c0_i32 : i32
    %1 = arith.extui %0 : i1 to i32
    %c0_i32_0 = arith.constant 0 : i32
    %2 = arith.cmpi ne, %1, %c0_i32_0 : i32
    scf.if %2 {
      %cst = arith.constant 0.000000e+00 : f32
      %23 = vector.broadcast %cst : f32 to vector<8x1xf32>
      %c0_9 = arith.constant 0 : index
      %c0_10 = arith.constant 0 : index
      %c0_11 = arith.constant 0 : index
      %24 = vector.load %arg6[%c0_9, %c0_10, %c0_11] : memref<1x8x1xf32, #tpu.memory_space<vmem>>, vector<1x8x1xf32>
      %25 = vector.shape_cast %24 : vector<1x8x1xf32> to vector<8x1xf32>
      %26 = vector.shape_cast %23 : vector<8x1xf32> to vector<1x8x1xf32>
      tpu.vector_store %arg6[%c0_9, %c0_10, %c0_11], %26 {strides = array<i32>} : memref<1x8x1xf32, #tpu.memory_space<vmem>>, vector<1x8x1xf32>,
      %cst_12 = arith.constant 0.000000e+00 : f32
      %27 = vector.broadcast %cst_12 : f32 to vector<8x1xf32>
      %c0_13 = arith.constant 0 : index
      %c0_14 = arith.constant 0 : index
      %c0_15 = arith.constant 0 : index
      %28 = vector.load %arg7[%c0_13, %c0_14, %c0_15] : memref<1x8x1xf32, #tpu.memory_space<vmem>>, vector<1x8x1xf32>
      %29 = vector.shape_cast %28 : vector<1x8x1xf32> to vector<8x1xf32>
      %30 = vector.shape_cast %27 : vector<8x1xf32> to vector<1x8x1xf32>
      tpu.vector_store %arg7[%c0_13, %c0_14, %c0_15], %30 {strides = array<i32>} : memref<1x8x1xf32, #tpu.memory_space<vmem>>, vector<1x8x1xf32>,
    } else {
    }
    %c0 = arith.constant 0 : index
    %c0_1 = arith.constant 0 : index
    %3 = vector.load %arg5[%c0, %c0_1] : memref<8x256xf32, #tpu.memory_space<vmem>>, vector<8x256xf32>
    %c0_2 = arith.constant 0 : index
    %c0_3 = arith.constant 0 : index
    %4 = vector.load %arg4[%c0_2, %c0_3] : memref<8x1xi32, #tpu.memory_space<vmem>>, vector<8x1xi32>
    %c1_i32 = arith.constant 1 : i32
    %5 = arith.muli %arg0, %c1_i32 : i32
    %6 = arith.addi %5, %arg2 : i32
    %c256_i32 = arith.constant 256 : i32
    %7 = arith.muli %6, %c256_i32 : i32
    %8 = tpu.iota {dimensions = array<i32: 1>} : vector<8x256xi32>
    %9 = vector.broadcast %7 : i32 to vector<8x256xi32>
    %10 = arith.addi %9, %8 : vector<8x256xi32>
    %11 = vector.broadcast %4 : vector<8x1xi32> to vector<8x256xi32>
    %12 = arith.cmpi eq, %10, %11 : vector<8x256xi32>
    %c0_4 = arith.constant 0 : index
    %c0_5 = arith.constant 0 : index
    %13 = memref.load %arg3[%c0_4, %c0_5] : memref<1x1xf32, #tpu.memory_space<smem>>
    %14 = vector.broadcast %13 : f32 to vector<8x256xf32>
    %15 = arith.mulf %14, %3 : vector<8x256xf32>
    %16 = math.exp %15 : vector<8x256xf32>
    %c0_i32_6 = arith.constant 0 : i32
    %17 = arith.cmpi eq, %6, %c0_i32_6 : i32
    %18 = arith.extui %17 : i1 to i32
    %c0_i32_7 = arith.constant 0 : i32
    %19 = arith.cmpi ne, %18, %c0_i32_7 : i32
    scf.if %19 {
      %c200_i32 = arith.constant 200 : i32
      %23 = vector.broadcast %c200_i32 : i32 to vector<8x256xi32>
      %24 = arith.cmpi slt, %10, %23 : vector<8x256xi32>
      %cst = arith.constant dense<true> : vector<8x256xi1>
      %25 = arith.xori %12, %cst : vector<8x256xi1>
      %26 = arith.andi %24, %25 : vector<8x256xi1>
      %c0_9 = arith.constant 0 : index
      %c0_10 = arith.constant 0 : index
      %c0_11 = arith.constant 0 : index
      %27 = vector.load %arg6[%c0_9, %c0_10, %c0_11] : memref<1x8x1xf32, #tpu.memory_space<vmem>>, vector<1x8x1xf32>
      %28 = vector.shape_cast %27 : vector<1x8x1xf32> to vector<8x1xf32>
      %cst_12 = arith.constant 0.000000e+00 : f32
      %29 = vector.broadcast %cst_12 : f32 to vector<8x256xf32>
      %30 = arith.select %26, %16, %29 : vector<8x256xi1>, vector<8x256xf32>
      %cst_13 = arith.constant dense<0.000000e+00> : vector<8xf32>
      %31 = vector.multi_reduction <add>, %30, %cst_13 [1] : vector<8x256xf32> to vector<8xf32>
      %32 = vector.shape_cast %31 : vector<8xf32> to vector<8x1xf32>
      %33 = arith.addf %28, %32 : vector<8x1xf32>
      %c0_14 = arith.constant 0 : index
      %c0_15 = arith.constant 0 : index
      %c0_16 = arith.constant 0 : index
      %34 = vector.load %arg6[%c0_14, %c0_15, %c0_16] : memref<1x8x1xf32, #tpu.memory_space<vmem>>, vector<1x8x1xf32>
      %35 = vector.shape_cast %34 : vector<1x8x1xf32> to vector<8x1xf32>
      %36 = vector.shape_cast %33 : vector<8x1xf32> to vector<1x8x1xf32>
      tpu.vector_store %arg6[%c0_14, %c0_15, %c0_16], %36 {strides = array<i32>} : memref<1x8x1xf32, #tpu.memory_space<vmem>>, vector<1x8x1xf32>,
      %c0_17 = arith.constant 0 : index
      %c0_18 = arith.constant 0 : index
      %c0_19 = arith.constant 0 : index
      %37 = vector.load %arg7[%c0_17, %c0_18, %c0_19] : memref<1x8x1xf32, #tpu.memory_space<vmem>>, vector<1x8x1xf32>
      %38 = vector.shape_cast %37 : vector<1x8x1xf32> to vector<8x1xf32>
      %cst_20 = arith.constant 0.000000e+00 : f32
      %39 = vector.broadcast %cst_20 : f32 to vector<8x256xf32>
      %40 = arith.select %12, %3, %39 : vector<8x256xi1>, vector<8x256xf32>
      %cst_21 = arith.constant dense<0.000000e+00> : vector<8xf32>
      %41 = vector.multi_reduction <add>, %40, %cst_21 [1] : vector<8x256xf32> to vector<8xf32>
      %42 = vector.shape_cast %41 : vector<8xf32> to vector<8x1xf32>
      %43 = arith.addf %38, %42 : vector<8x1xf32>
      %c0_22 = arith.constant 0 : index
      %c0_23 = arith.constant 0 : index
      %c0_24 = arith.constant 0 : index
      %44 = vector.load %arg7[%c0_22, %c0_23, %c0_24] : memref<1x8x1xf32, #tpu.memory_space<vmem>>, vector<1x8x1xf32>
      %45 = vector.shape_cast %44 : vector<1x8x1xf32> to vector<8x1xf32>
      %46 = vector.shape_cast %43 : vector<8x1xf32> to vector<1x8x1xf32>
      tpu.vector_store %arg7[%c0_22, %c0_23, %c0_24], %46 {strides = array<i32>} : memref<1x8x1xf32, #tpu.memory_space<vmem>>, vector<1x8x1xf32>,
    } else {
    }
    %true = arith.constant true
    %20 = arith.xori %17, %true : i1
    %21 = arith.extui %20 : i1 to i32
    %c0_i32_8 = arith.constant 0 : i32
    %22 = arith.cmpi ne, %21, %c0_i32_8 : i32
    scf.if %22 {
      %cst = arith.constant dense<true> : vector<8x256xi1>
      %23 = arith.xori %12, %cst : vector<8x256xi1>
      %c0_9 = arith.constant 0 : index
      %c0_10 = arith.constant 0 : index
      %c0_11 = arith.constant 0 : index
      %24 = vector.load %arg6[%c0_9, %c0_10, %c0_11] : memref<1x8x1xf32, #tpu.memory_space<vmem>>, vector<1x8x1xf32>
      %25 = vector.shape_cast %24 : vector<1x8x1xf32> to vector<8x1xf32>
      %cst_12 = arith.constant 0.000000e+00 : f32
      %26 = vector.broadcast %cst_12 : f32 to vector<8x256xf32>
      %27 = arith.select %23, %16, %26 : vector<8x256xi1>, vector<8x256xf32>
      %cst_13 = arith.constant dense<0.000000e+00> : vector<8xf32>
      %28 = vector.multi_reduction <add>, %27, %cst_13 [1] : vector<8x256xf32> to vector<8xf32>
      %29 = vector.shape_cast %28 : vector<8xf32> to vector<8x1xf32>
      %30 = arith.addf %25, %29 : vector<8x1xf32>
      %c0_14 = arith.constant 0 : index
      %c0_15 = arith.constant 0 : index
      %c0_16 = arith.constant 0 : index
      %31 = vector.load %arg6[%c0_14, %c0_15, %c0_16] : memref<1x8x1xf32, #tpu.memory_space<vmem>>, vector<1x8x1xf32>
      %32 = vector.shape_cast %31 : vector<1x8x1xf32> to vector<8x1xf32>
      %33 = vector.shape_cast %30 : vector<8x1xf32> to vector<1x8x1xf32>
      tpu.vector_store %arg6[%c0_14, %c0_15, %c0_16], %33 {strides = array<i32>} : memref<1x8x1xf32, #tpu.memory_space<vmem>>, vector<1x8x1xf32>,
      %c0_17 = arith.constant 0 : index
      %c0_18 = arith.constant 0 : index
      %c0_19 = arith.constant 0 : index
      %34 = vector.load %arg7[%c0_17, %c0_18, %c0_19] : memref<1x8x1xf32, #tpu.memory_space<vmem>>, vector<1x8x1xf32>
      %35 = vector.shape_cast %34 : vector<1x8x1xf32> to vector<8x1xf32>
      %cst_20 = arith.constant 0.000000e+00 : f32
      %36 = vector.broadcast %cst_20 : f32 to vector<8x256xf32>
      %37 = arith.select %12, %3, %36 : vector<8x256xi1>, vector<8x256xf32>
      %cst_21 = arith.constant dense<0.000000e+00> : vector<8xf32>
      %38 = vector.multi_reduction <add>, %37, %cst_21 [1] : vector<8x256xf32> to vector<8xf32>
      %39 = vector.shape_cast %38 : vector<8xf32> to vector<8x1xf32>
      %40 = arith.addf %35, %39 : vector<8x1xf32>
      %c0_22 = arith.constant 0 : index
      %c0_23 = arith.constant 0 : index
      %c0_24 = arith.constant 0 : index
      %41 = vector.load %arg7[%c0_22, %c0_23, %c0_24] : memref<1x8x1xf32, #tpu.memory_space<vmem>>, vector<1x8x1xf32>
      %42 = vector.shape_cast %41 : vector<1x8x1xf32> to vector<8x1xf32>
      %43 = vector.shape_cast %40 : vector<8x1xf32> to vector<1x8x1xf32>
      tpu.vector_store %arg7[%c0_22, %c0_23, %c0_24], %43 {strides = array<i32>} : memref<1x8x1xf32, #tpu.memory_space<vmem>>, vector<1x8x1xf32>,
    } else {
    }
    return
  }
  func.func @transform_0(%arg0: i32, %arg1: i32, %arg2: i32) -> (i32, i32) {
    %c0_i32 = arith.constant 0 : i32
    %c0_i32_0 = arith.constant 0 : i32
    %c0_i32_1 = arith.constant 0 : i32
    return %c0_i32, %c0_i32_0 : i32, i32
  }
  func.func @transform_1(%arg0: i32, %arg1: i32, %arg2: i32) -> (i32, i32) {
    %c0_i32 = arith.constant 0 : i32
    %c0_i32_0 = arith.constant 0 : i32
    return %arg1, %c0_i32 : i32, i32
  }
  func.func @transform_2(%arg0: i32, %arg1: i32, %arg2: i32) -> (i32, i32) {
    %c1_i32 = arith.constant 1 : i32
    %0 = arith.muli %arg0, %c1_i32 : i32
    %1 = arith.addi %0, %arg2 : i32
    %c0_i32 = arith.constant 0 : i32
    return %arg1, %1 : i32, i32
  }
  func.func @transform_3(%arg0: i32, %arg1: i32, %arg2: i32) -> (i32, i32, i32) {
    %c0_i32 = arith.constant 0 : i32
    %c0_i32_0 = arith.constant 0 : i32
    return %arg0, %arg1, %c0_i32 : i32, i32, i32
  }
  func.func @transform_4(%arg0: i32, %arg1: i32, %arg2: i32) -> (i32, i32, i32) {
    %c0_i32 = arith.constant 0 : i32
    %c0_i32_0 = arith.constant 0 : i32
    return %arg0, %arg1, %c0_i32 : i32, i32, i32
  }
}

module attributes {stable_mosaic.version = 11 : i64} {
  func.func @_adacos_scale_kernel(%arg0: i32, %arg1: i32, %arg2: memref<1x1xf32, #tpu.memory_space<smem>>, %arg3: memref<8x256xf32, #tpu.memory_space<vmem>>, %arg4: memref<8x256xf32, #tpu.memory_space<vmem>>) attributes {dimension_semantics = [#tpu.dimension_semantics<parallel>, #tpu.dimension_semantics<parallel>], iteration_bounds = array<i64: 1, 1>, scalar_prefetch = 0 : i64, scratch_operands = 0 : i64, tpu.core_type = #tpu.core_type<tc>, window_params = [{transform_indices = @transform_0, window_bounds = array<i64: 1, 1>}, {transform_indices = @transform_1, window_bounds = array<i64: 8, 256>}, {transform_indices = @transform_2, window_bounds = array<i64: 8, 256>}]} {
    %c0 = arith.constant 0 : index
    %c0_0 = arith.constant 0 : index
    %0 = vector.load %arg3[%c0, %c0_0] : memref<8x256xf32, #tpu.memory_space<vmem>>, vector<8x256xf32>
    %c0_1 = arith.constant 0 : index
    %c0_2 = arith.constant 0 : index
    %1 = memref.load %arg2[%c0_1, %c0_2] : memref<1x1xf32, #tpu.memory_space<smem>>
    %2 = vector.broadcast %1 : f32 to vector<8x256xf32>
    %3 = arith.mulf %0, %2 : vector<8x256xf32>
    %c0_3 = arith.constant 0 : index
    %c0_4 = arith.constant 0 : index
    %4 = vector.load %arg4[%c0_3, %c0_4] : memref<8x256xf32, #tpu.memory_space<vmem>>, vector<8x256xf32>
    tpu.vector_store %arg4[%c0_3, %c0_4], %3 {strides = array<i32>} : memref<8x256xf32, #tpu.memory_space<vmem>>, vector<8x256xf32>,
    return
  }
  func.func @transform_0(%arg0: i32, %arg1: i32) -> (i32, i32) {
    %c0_i32 = arith.constant 0 : i32
    %c0_i32_0 = arith.constant 0 : i32
    %c0_i32_1 = arith.constant 0 : i32
    return %c0_i32, %c0_i32_0 : i32, i32
  }
  func.func @transform_1(%arg0: i32, %arg1: i32) -> (i32, i32) {
    %c0_i32 = arith.constant 0 : i32
    return %arg0, %arg1 : i32, i32
  }
  func.func @transform_2(%arg0: i32, %arg1: i32) -> (i32, i32) {
    %c0_i32 = arith.constant 0 : i32
    return %arg0, %arg1 : i32, i32
  }
}

</mosaic_0001>

<bundles_post_ra>
// kernel: adacos_forward.2
= control target key start
LH: loop header
LB: loop body
LE: loop exit
PB: predicated region body
PF: predicated region fallthrough
CT: control target
= control target key end

     0   :  { %11 = vsyncpa [#allocation4], 0  ;;  %s158_s15 = smov [#allocation3]   ;;  %s227_s0 = inlined_call_operand.<no memory space> [shape: f32[1,1], index: 0, kind: input, shape index: {}]   ;;  %s228_s1 = inlined_call_operand.vmem [shape: s32[8,1], index: 1, kind: input, shape index: {}]   ;;  %s229_s2 = inlined_call_operand.hbm [shape: f32[8,200], index: 2, kind: input, shape index: {}]   ;;  %s230_s3 = inlined_call_operand.vmem [shape: f32[1,8,1], index: 3, kind: output, shape index: {0}]   ;;  %s231_s4 = inlined_call_operand.vmem [shape: f32[1,8,1], index: 4, kind: output, shape index: {1}]  }
   0x1   :  { %s26_s16 = sshll.u32 %s158_s15, 4  ;;  %s134_s19 = scalar_lea.hbm %s229_s2, 256  ;;  %s27_s16 = int_to_ptr.vmem [resolvable:$true] %s26_s16 }
   0x2   :  { %p135_p0 = scmp.ne.s32.totalorder %s229_s2, %s134_s19  ;;  %p138_p1 = scmp.lt.u32.totalorder %s134_s19, %s229_s2 }
   0x4   :  { %p140_p2 = pnand %p138_p1, %p135_p0 }
   0x6   :  { %143 = shalt.err (!%p140_p2)
}
   0x7   :  { %s144_s24 = scalar_lea.vmem %s27_s16, 256  ;;  %p149_p4 = scmp.lt.s32.totalorder %s27_s16, %s27_s16 }
   0x8   :  { %p145_p3 = scmp.ne.s32.totalorder %s27_s16, %s144_s24  ;;  %p150_p5 = scmp.lt.s32.totalorder %s144_s24, %s144_s24 }
   0xa   :  { %p151_p6 = por %p150_p5, %p149_p4 }
   0xc   :  { %p152_p7 = pnand %p151_p6, %p145_p3 }
   0xe   :  { %155 = shalt.err (!%p152_p7)
}
   0xf   :  { %29 = dma.hbm_to_vmem [thread:$0]  %s229_s2, 256, %s27_s16, [#allocation4]  }
  0x10   :  { %156 = dma.done.wait [#allocation4], 256  }
  0x11   :  { %157 = vsyncadd [#allocation4], 4294967040  ;;  %v159_v0 = vmov 0   ;;  %v44_v1 = vld [vmem:[%s228_s1] sm:$0xff]  ;;  %vm39_vm0 = vcmask 7168   ;;  %v160_v2 = vmov 0.0   ;;  %v59_v4 = vstv %s227_s0 }
  0x12   :  { %129 = vset.pattern.permute.xlu0 %v159_v0  ;;  %41 = vst.msk [vmem:[%s231_s4] sm:$0xff] %vm39_vm0, %v160_v2  ;;  %40 = vst.msk [vmem:[%s230_s3] sm:$0xff] %vm39_vm0, %v160_v2  ;;  %v42_v3 = vld [vmem:[#allocation3] sm:$0xff]  ;;  %v43_v5 = vld [vmem:[#allocation3 + $0x8] sm:$0xff]  ;;  %v47_v10 = vlaneseq  ;;  %vm161_vm4 = vmmov 1  }
  0x13   :  { %54 = vperm.xlu0 %129, %v44_v1   ;;  %v60_v6 = vmul.f32 %v59_v4, %v42_v3  ;;  %v61_v7 = vmul.f32 %v59_v4, %v43_v5 }
  0x14   :  { %v48_v11 = vand.u32 127, %v47_v10 }
  0x15   :  { %v62_v8 = vmul.f32 1.442695, %v60_v6  ;;  %v64_v9 = vmul.f32 1.442695, %v61_v7 }
  0x16   :  { %v49_v12 = vadd.s32 128, %v48_v11 }
  0x17   :  { %130 = vpow2.f32 %v62_v8 }
  0x18   :  { %132 = vpow2.f32 %v64_v9  ;;  %vm71_vm3 = vcmp.lt.s32.totalorder %v49_v12, 200 }
  0x19   :  { %v85_v22 = vld [vmem:[%s231_s4] sm:$0xff] }
  0x1a   :  { %v76_v25 = vld [vmem:[%s230_s3] sm:$0xff] }
  0x21   :  { %v131_v13 = vpop.eup %130 }
  0x22   :  { %v133_v15 = vpop.eup %132 }
  0x92   :  { %v55_v14 = vpop.permute.xlu0 %54 }
  0x93   :  { %vm56_vm1 = vcmp.eq.s32.totalorder %v48_v11, %v55_v14  ;;  %vm57_vm2 = vcmp.eq.s32.totalorder %v49_v12, %v55_v14 }
  0x94   :  { %vm72_vm5 = vmxor %vm56_vm1, %vm161_vm4  ;;  %v86_v16 = vsel %vm56_vm1, %v42_v3, 0.0  ;;  %v87_v17 = vsel %vm57_vm2, %v43_v5, 0.0 }
  0x95   :  { %vm73_vm6 = vmxor %vm57_vm2, %vm161_vm4  ;;  %v88_v18 = vadd.f32 %v87_v17, %v86_v16  ;;  %v77_v19 = vsel %vm72_vm5, %v131_v13, 0.0 }
  0x96   :  { %vm75_vm7 = vmand %vm71_vm3, %vm73_vm6 }
  0x97   :  { %89 = vadd.xlane.f32.xlu1 %v88_v18  ;;  %v78_v20 = vsel %vm75_vm7, %v133_v15, 0.0 }
  0x98   :  { %v79_v21 = vadd.f32 %v78_v20, %v77_v19 }
  0x9a   :  { %80 = vadd.xlane.f32.xlu0 %v79_v21 }
 0x124   :  { %v90_v23 = vpop.xlane.xlu1 %89 }
 0x125   :  { %v91_v24 = vadd.f32 %v90_v23, %v85_v22 }
 0x127   :  { %92 = vst.msk [vmem:[%s231_s4] sm:$0xff] %vm39_vm0, %v91_v24  ;;  %v81_v26 = vpop.xlane.xlu0 %80 }
 0x128   :  { %v82_v27 = vadd.f32 %v81_v26, %v76_v25 }
 0x12a   :  { %84 = vst.msk [vmem:[%s230_s3] sm:$0xff] %vm39_vm0, %v82_v27 }
 0x12b   :  { %124 = vsyncpa [#allocation4], 1 }

// kernel: adacos_forward.3
= control target key start
LH: loop header
LB: loop body
LE: loop exit
PB: predicated region body
PF: predicated region fallthrough
CT: control target
= control target key end

     0   :  { %s97_s0 = inlined_call_operand.<no memory space> [shape: f32[1,1], index: 0, kind: input, shape index: {}]   ;;  %s98_s1 = inlined_call_operand.vmem [shape: f32[8,200], index: 1, kind: input, shape index: {}]   ;;  %s99_s2 = inlined_call_operand.hbm [shape: f32[8,200], index: 2, kind: output, shape index: {}]  }
   0x1   :  { %v13_v0 = vld [vmem:[%s98_s1] sm:$0xff]  ;;  %v16_v1 = vstv %s97_s0  ;;  %v14_v2 = vld [vmem:[%s98_s1 + $0x8] sm:$0xff] }
   0x2   :  { %8 = vsyncpa [#allocation4], 0  ;;  %v17_v3 = vmul.f32 %v16_v1, %v13_v0  ;;  %v18_v4 = vmul.f32 %v16_v1, %v14_v2  ;;  %s60_s15 = smov [#allocation3]  }
   0x3   :  { %s27_s16 = sshll.u32 %s60_s15, 4  ;;  %s28_s16 = int_to_ptr.vmem [resolvable:$true] %s27_s16 }
   0x4   :  { %19 = vst [vmem:[#allocation3] sm:$0xff] %v17_v3  ;;  %20 = vst [vmem:[#allocation3 + $0x8] sm:$0xff] %v18_v4  ;;  %s36_s17 = scalar_lea.vmem %s28_s16, 256  ;;  %p41_p1 = scmp.lt.s32.totalorder %s28_s16, %s28_s16 }
   0x5   :  { %p37_p0 = scmp.ne.s32.totalorder %s28_s16, %s36_s17  ;;  %p42_p2 = scmp.lt.s32.totalorder %s36_s17, %s36_s17 }
   0x7   :  { %p43_p3 = por %p42_p2, %p41_p1 }
   0x9   :  { %p44_p4 = pnand %p43_p3, %p37_p0 }
   0xb   :  { %47 = shalt.err (!%p44_p4)
}
   0xc   :  { %s48_s19 = scalar_lea.hbm %s99_s2, 256 }
   0xd   :  { %p49_p5 = scmp.ne.s32.totalorder %s99_s2, %s48_s19  ;;  %p52_p6 = scmp.lt.u32.totalorder %s48_s19, %s99_s2 }
   0xf   :  { %p54_p7 = pnand %p52_p6, %p49_p5 }
  0x11   :  { %57 = shalt.err (!%p54_p7)
}
  0x12   :  { %30 = dma.vmem_to_hbm [thread:$0]  %s28_s16, 256, %s99_s2, [#allocation4]  }
  0x13   :  { %58 = dma.done.wait [#allocation4], 256  }
  0x14   :  { %59 = vsyncadd [#allocation4], 4294967040 }
  0x15   :  { %34 = vsyncpa [#allocation4], 1 }

</bundles_post_ra>
